<compile_context>
chip_gen: v7x
topology: tpu7x:2x2x1
jax: 0.10.0
libtpu: 0.0.40
codegen_flags: <defaults>
</compile_context>

<pallas_src>
import functools

import jax
import jax.numpy as jnp
import numpy as np
from jax import lax
from jax.experimental import pallas as pl
from jax.experimental.pallas import tpu as pltpu


def _round_up(v, m):
    return (v + m - 1) // m * m


def _lane_mask(width, pitch, valid_rows, valid_cols):
    """(1, width) f32 mask: lane j is valid iff j < valid_rows*pitch and
    (j mod pitch) < valid_cols.  Built from an int iota + f32 floor-div (exact
    for these small integer ranges) so it never relies on vector int div/rem."""
    j = lax.broadcasted_iota(jnp.int32, (1, width), 1).astype(jnp.float32)
    row = jnp.floor((j + 0.5) * (1.0 / float(pitch)))
    col = j - row * float(pitch)                      # exact small integers in f32
    ok = (j < float(valid_rows * pitch)) & (col < float(valid_cols))
    return ok.astype(jnp.float32)


def _updown_kernel(x_ref, w1_ref, w2_ref, aff_ref, o_ref, *,
                   K, Wp, L1, Lout, H, W, C1, C2,
                   inv1, inv2, eps, apply_relu):
    H1, W1 = H + K - 1, W + K - 1
    offs = [kh * Wp + kw for kh in range(K) for kw in range(K)]

    xv = x_ref[0]                                     # (Cp, Lin) flat padded input
    aff = aff_ref[...]                                # (Cmax, 4): [g1, be1, g2, be2]

    # ---- UpBlock ConvTranspose2d(stride=1): one MXU matmul on the tap-stacked
    # operand built from K*K static lane-shifted views of the zero-padded input
    # (im2col done in VMEM).  Conv bias omitted: a per-channel constant is
    # exactly cancelled by the InstanceNorm mean subtraction that follows.
    xs = jnp.concatenate([xv[:, off:off + L1] for off in offs], axis=0)   # (K*K*Cp, L1)
    y = jnp.dot(w1_ref[...], xs, preferred_element_type=jnp.float32)      # (C1, L1)

    # ---- InstanceNorm2d(affine) over the H1*W1 valid lanes (single-pass stats),
    # then ReLU.  gamma is folded into the normalization scale.
    m1 = _lane_mask(L1, Wp, H1, W1)
    ym = y * m1
    s1 = jnp.sum(ym, axis=1, keepdims=True)
    s2 = jnp.sum(ym * ym, axis=1, keepdims=True)
    mean1 = s1 * inv1
    var1 = s2 * inv1 - mean1 * mean1
    scale1 = aff[:C1, 0:1] * lax.rsqrt(var1 + eps)
    y = (y - mean1) * scale1 + aff[:C1, 1:2]
    if apply_relu:
        y = jnp.maximum(y, 0.0)

    # ---- DownBlock Conv2d(stride=1, padding=0): same tap-stacking trick on y.
    # Valid output lanes only ever read valid y lanes (rows < H1, cols < W1),
    # so the un-masked pitch-pad / tail lanes of y are harmless (finite, cropped).
    ys = jnp.concatenate([y[:, off:off + Lout] for off in offs], axis=0)  # (K*K*C1, Lout)
    z = jnp.dot(w2_ref[...], ys, preferred_element_type=jnp.float32)      # (C2, Lout)

    # ---- InstanceNorm2d(affine) over the H*W valid lanes, then ReLU.
    m2 = _lane_mask(Lout, Wp, H, W)
    zm = z * m2
    t1 = jnp.sum(zm, axis=1, keepdims=True)
    t2 = jnp.sum(zm * zm, axis=1, keepdims=True)
    mean2 = t1 * inv2
    var2 = t2 * inv2 - mean2 * mean2
    scale2 = aff[:C2, 2:3] * lax.rsqrt(var2 + eps)
    z = (z - mean2) * scale2 + aff[:C2, 3:4]
    if apply_relu:
        z = jnp.maximum(z, 0.0)
    # UpDownBock's trailing activation is the same ReLU -> idempotent, skipped.
    # TODO(synk): a non-idempotent trailing activation would need one more
    # elementwise pass here (apply_relu only models nn.ReLU / None).

    o_ref[0] = z.astype(o_ref.dtype)                  # single lane-dense full-width store


def prepare_updown_params(w1, gamma1, beta1, w2, gamma2, beta2, *, kernel_size):
    """One-time weight re-layout (hoisted out of the per-call path)."""
    K = kernel_size
    Cin, C1 = w1.shape[0], w1.shape[1]
    C2 = w2.shape[0]
    Cp = _round_up(Cin, 8)                            # sublane-tile aligned per tap

    # ConvTranspose2d(stride=1) == VALID correlation of the (K-1)-padded input
    # with the spatially flipped, in/out-swapped kernel.  Layout: (C1, K*K*Cp)
    # with column (kh*K+kw)*Cp + cin matching the in-kernel tap stacking order.
    w1c = jnp.transpose(w1[:, :, ::-1, ::-1].astype(jnp.float32), (1, 2, 3, 0))  # (C1,K,K,Cin)
    w1c = jnp.pad(w1c, ((0, 0), (0, 0), (0, 0), (0, Cp - Cin)))
    w1s = w1c.reshape(C1, K * K * Cp)

    # Conv2d is already a correlation; regroup taps onto the contraction axis.
    w2s = jnp.transpose(w2.astype(jnp.float32), (0, 2, 3, 1)).reshape(C2, K * K * C1)

    # Pack the four per-channel affine params into ONE tiny tensor.
    Cmax = max(C1, C2)

    def col(v):
        v = v.reshape(-1, 1).astype(jnp.float32)
        return jnp.pad(v, ((0, Cmax - v.shape[0]), (0, 0)))

    aff = jnp.concatenate([col(gamma1), col(beta1), col(gamma2), col(beta2)], axis=1)
    return dict(w1s=w1s, w2s=w2s, aff=aff)


@functools.partial(jax.jit, static_argnames=("kernel_size", "eps", "apply_relu"))
def updown_forward(x, params, *, kernel_size, eps=1e-5, apply_relu=True):
    N, Cin, H, W = x.shape
    K = kernel_size
    C1 = params["w1s"].shape[0]
    C2 = params["w2s"].shape[0]
    Cp = params["w1s"].shape[1] // (K * K)

    H1, W1 = H + K - 1, W + K - 1           # UpBlock output spatial size
    Wp = W + 2 * (K - 1)                    # row pitch of the flat layout
    shift = (K - 1) * Wp + (K - 1)          # largest static lane shift in-kernel
    Lout = _round_up(H * Wp, 128)           # lane-dense final flat width
    L1 = _round_up(shift + Lout, 128)       # intermediate flat width (+ headroom)
    rows_in = pl.cdiv(shift + L1, Wp)       # padded-input rows needed
    Lin = rows_in * Wp                      # flattened padded-input width

    # Static safety: in-kernel static slices must stay inside their operands.
    assert Lin >= shift + L1 and L1 >= shift + Lout
    assert rows_in >= H + 2 * (K - 1)

    # Single host pad: channel pad to Cp, spatial pad by K-1 (plus extra zero
    # rows at the bottom to reach Lin), then a free reshape onto the lane axis.
    extra_rows = rows_in - (H + 2 * (K - 1))
    xflat = jnp.pad(
        x.astype(jnp.float32),
        ((0, 0), (0, Cp - Cin), (K - 1, K - 1 + extra_rows), (K - 1, K - 1)),
    ).reshape(N, Cp, Lin)

    kernel = functools.partial(
        _updown_kernel, K=K, Wp=Wp, L1=L1, Lout=Lout, H=H, W=W, C1=C1, C2=C2,
        inv1=1.0 / float(H1 * W1), inv2=1.0 / float(H * W),
        eps=eps, apply_relu=apply_relu)

    out_flat = pl.pallas_call(
        kernel,
        out_shape=jax.ShapeDtypeStruct((N, C2, Lout), jnp.float32),
        grid=(N,),
        in_specs=[
            pl.BlockSpec((1, Cp, Lin), lambda n: (n, 0, 0)),
            pl.BlockSpec((C1, K * K * Cp), lambda n: (0, 0)),   # resident weights
            pl.BlockSpec((C2, K * K * C1), lambda n: (0, 0)),   # resident weights
            pl.BlockSpec(params["aff"].shape, lambda n: (0, 0)),
        ],
        out_specs=pl.BlockSpec((1, C2, Lout), lambda n: (n, 0, 0)),
        compiler_params=pltpu.CompilerParams(
            # Parallel batch axis: each v7x TensorCore takes one sample; on
            # single-TC v5e/v6e the ~0.35us/step overhead at N=2 is negligible.
            dimension_semantics=("parallel",)),
    )(xflat, params["w1s"], params["w2s"], params["aff"])

    # Drop the lane-pad tail and pitch-pad columns (one fused XLA copy).
    return out_flat[:, :, :H * Wp].reshape(N, C2, H, Wp)[:, :, :, :W]


def reference_updown(x, w1, b1, g1, be1, w2, b2, g2, be2, *, kernel_size, eps=1e-5):
    """Pure-JAX reference matching the PyTorch UpDownBock forward (with biases)."""
    K = kernel_size

    def inorm(y, g, be):
        m = y.mean(axis=(2, 3), keepdims=True)
        v = ((y - m) ** 2).mean(axis=(2, 3), keepdims=True)
        return (y - m) * lax.rsqrt(v + eps) * g[None, :, None, None] + be[None, :, None, None]

    # UpBlock: ConvTranspose2d(stride=1) -> InstanceNorm -> ReLU
    rhs = jnp.transpose(w1[:, :, ::-1, ::-1], (1, 0, 2, 3))
    y = lax.conv_general_dilated(x, rhs, (1, 1), [(K - 1, K - 1), (K - 1, K - 1)],
                                 dimension_numbers=('NCHW', 'OIHW', 'NCHW'))
    y = y + b1[None, :, None, None]
    y = jnp.maximum(inorm(y, g1, be1), 0.0)
    # DownBlock: Conv2d(stride=1, padding=0) -> InstanceNorm -> ReLU
    z = lax.conv_general_dilated(y, w2, (1, 1), 'VALID',
                                 dimension_numbers=('NCHW', 'OIHW', 'NCHW'))
    z = z + b2[None, :, None, None]
    z = jnp.maximum(inorm(z, g2, be2), 0.0)
    # UpDownBock's trailing activation (ReLU again).
    return jnp.maximum(z, 0.0)


if __name__ == "__main__":
    # UpDownBock(up_in_ch=4, up_out_ch=8, down_out_ch=8, kernel_size=3, activation=nn.ReLU())
    N, Cin, C1, C2, H, W, K = 2, 4, 8, 8, 16, 16, 3

    key = jax.random.PRNGKey(0)
    ks = jax.random.split(key, 9)
    x = jax.random.normal(ks[0], (N, Cin, H, W), jnp.float32)
    # ConvTranspose2d weight layout: (in_channels, out_channels, kH, kW)
    w1 = 0.1 * jax.random.normal(ks[1], (Cin, C1, K, K), jnp.float32)
    b1 = 0.1 * jax.random.normal(ks[2], (C1,), jnp.float32)
    g1 = 1.0 + 0.1 * jax.random.normal(ks[3], (C1,), jnp.float32)
    be1 = 0.1 * jax.random.normal(ks[4], (C1,), jnp.float32)
    # Conv2d weight layout: (out_channels, in_channels, kH, kW)
    w2 = 0.1 * jax.random.normal(ks[5], (C2, C1, K, K), jnp.float32)
    b2 = 0.1 * jax.random.normal(ks[6], (C2,), jnp.float32)
    g2 = 1.0 + 0.1 * jax.random.normal(ks[7], (C2,), jnp.float32)
    be2 = 0.1 * jax.random.normal(ks[8], (C2,), jnp.float32)

    # Biases b1/b2 are NOT passed to the kernel: a per-channel constant added
    # before InstanceNorm is exactly cancelled by the mean subtraction, so the
    # kernel drops that dead work (the reference above includes them).
    params = prepare_updown_params(w1, g1, be1, w2, g2, be2, kernel_size=K)
    out = updown_forward(x, params, kernel_size=K)
    out = jax.block_until_ready(out)

    ref = reference_updown(x, w1, b1, g1, be1, w2, b2, g2, be2, kernel_size=K)
    assert out.shape == (N, C2, H, W), out.shape
    np.testing.assert_allclose(np.asarray(out), np.asarray(ref),
                               rtol=1e-4, atol=1e-4)
    print("KERNEL_OK")
</pallas_src>

<mosaic_0001>
module attributes {stable_mosaic.version = 11 : i64} {
  func.func @_updown_kernel(%arg0: i32, %arg1: memref<1x8x560xf32, #tpu.memory_space<vmem>>, %arg2: memref<8x72xf32, #tpu.memory_space<vmem>>, %arg3: memref<8x72xf32, #tpu.memory_space<vmem>>, %arg4: memref<8x4xf32, #tpu.memory_space<vmem>>, %arg5: memref<1x8x384xf32, #tpu.memory_space<vmem>>) attributes {dimension_semantics = [#tpu.dimension_semantics<parallel>], iteration_bounds = array<i64: 2>, scalar_prefetch = 0 : i64, scratch_operands = 0 : i64, tpu.core_type = #tpu.core_type<tc>, window_params = [{transform_indices = @transform_0, window_bounds = array<i64: 1, 8, 560>}, {pipeline_mode = #tpu.pipeline_mode<synchronous>, transform_indices = @transform_1, window_bounds = array<i64: 8, 72>}, {pipeline_mode = #tpu.pipeline_mode<synchronous>, transform_indices = @transform_2, window_bounds = array<i64: 8, 72>}, {pipeline_mode = #tpu.pipeline_mode<synchronous>, transform_indices = @transform_3, window_bounds = array<i64: 8, 4>}, {transform_indices = @transform_4, window_bounds = array<i64: 1, 8, 384>}]} {
    %c0 = arith.constant 0 : index
    %c0_0 = arith.constant 0 : index
    %c0_1 = arith.constant 0 : index
    %0 = vector.load %arg1[%c0, %c0_0, %c0_1] : memref<1x8x560xf32, #tpu.memory_space<vmem>>, vector<1x8x560xf32>
    %1 = vector.shape_cast %0 : vector<1x8x560xf32> to vector<8x560xf32>
    %c0_2 = arith.constant 0 : index
    %c0_3 = arith.constant 0 : index
    %2 = vector.load %arg4[%c0_2, %c0_3] : memref<8x4xf32, #tpu.memory_space<vmem>>, vector<8x4xf32>
    %3 = vector.extract_strided_slice %1 {offsets = [0, 0], sizes = [8, 512], strides = [1, 1]} : vector<8x560xf32> to vector<8x512xf32>
    %4 = vector.extract_strided_slice %1 {offsets = [0, 1], sizes = [8, 512], strides = [1, 1]} : vector<8x560xf32> to vector<8x512xf32>
    %5 = vector.extract_strided_slice %1 {offsets = [0, 2], sizes = [8, 512], strides = [1, 1]} : vector<8x560xf32> to vector<8x512xf32>
    %6 = vector.extract_strided_slice %1 {offsets = [0, 20], sizes = [8, 512], strides = [1, 1]} : vector<8x560xf32> to vector<8x512xf32>
    %7 = vector.extract_strided_slice %1 {offsets = [0, 21], sizes = [8, 512], strides = [1, 1]} : vector<8x560xf32> to vector<8x512xf32>
    %8 = vector.extract_strided_slice %1 {offsets = [0, 22], sizes = [8, 512], strides = [1, 1]} : vector<8x560xf32> to vector<8x512xf32>
    %9 = vector.extract_strided_slice %1 {offsets = [0, 40], sizes = [8, 512], strides = [1, 1]} : vector<8x560xf32> to vector<8x512xf32>
    %10 = vector.extract_strided_slice %1 {offsets = [0, 41], sizes = [8, 512], strides = [1, 1]} : vector<8x560xf32> to vector<8x512xf32>
    %11 = vector.extract_strided_slice %1 {offsets = [0, 42], sizes = [8, 512], strides = [1, 1]} : vector<8x560xf32> to vector<8x512xf32>
    %12 = tpu.concatenate %3, %4, %5, %6, %7, %8, %9, %10, %11 in 0 : vector<8x512xf32>, vector<8x512xf32>, vector<8x512xf32>, vector<8x512xf32>, vector<8x512xf32>, vector<8x512xf32>, vector<8x512xf32>, vector<8x512xf32>, vector<8x512xf32> -> vector<72x512xf32>
    %c0_4 = arith.constant 0 : index
    %c0_5 = arith.constant 0 : index
    %13 = vector.load %arg2[%c0_4, %c0_5] : memref<8x72xf32, #tpu.memory_space<vmem>>, vector<8x72xf32>
    %cst = arith.constant dense<0.000000e+00> : vector<8x512xf32>
    %14 = tpu.matmul %13, %12, %cst {dimension_numbers = #tpu.dot_dimension_numbers<[1], [0], [0], [1], [0, 0, 1, 1], [], []>} : vector<8x72xf32>, vector<72x512xf32>, vector<8x512xf32> -> vector<8x512xf32>
    %15 = tpu.iota {dimensions = array<i32: 1>} : vector<1x512xi32>
    %16 = arith.sitofp %15 : vector<1x512xi32> to vector<1x512xf32>
    %cst_6 = arith.constant 5.000000e-01 : f32
    %17 = vector.broadcast %cst_6 : f32 to vector<1x512xf32>
    %18 = arith.addf %16, %17 : vector<1x512xf32>
    %cst_7 = arith.constant 5.000000e-02 : f32
    %19 = vector.broadcast %cst_7 : f32 to vector<1x512xf32>
    %20 = arith.mulf %18, %19 : vector<1x512xf32>
    %21 = math.floor %20 : vector<1x512xf32>
    %cst_8 = arith.constant 2.000000e+01 : f32
    %22 = vector.broadcast %cst_8 : f32 to vector<1x512xf32>
    %23 = arith.mulf %21, %22 : vector<1x512xf32>
    %24 = arith.subf %16, %23 : vector<1x512xf32>
    %cst_9 = arith.constant 3.600000e+02 : f32
    %25 = vector.broadcast %cst_9 : f32 to vector<1x512xf32>
    %26 = arith.cmpf olt, %16, %25 : vector<1x512xf32>
    %cst_10 = arith.constant 1.800000e+01 : f32
    %27 = vector.broadcast %cst_10 : f32 to vector<1x512xf32>
    %28 = arith.cmpf olt, %24, %27 : vector<1x512xf32>
    %29 = arith.andi %26, %28 : vector<1x512xi1>
    %30 = arith.extui %29 : vector<1x512xi1> to vector<1x512xi32>
    %31 = arith.sitofp %30 : vector<1x512xi32> to vector<1x512xf32>
    %32 = vector.broadcast %31 : vector<1x512xf32> to vector<8x512xf32>
    %33 = arith.mulf %14, %32 : vector<8x512xf32>
    %cst_11 = arith.constant dense<0.000000e+00> : vector<8xf32>
    %34 = vector.multi_reduction <add>, %33, %cst_11 [1] : vector<8x512xf32> to vector<8xf32>
    %35 = vector.shape_cast %34 : vector<8xf32> to vector<8x1xf32>
    %36 = arith.mulf %33, %33 : vector<8x512xf32>
    %cst_12 = arith.constant dense<0.000000e+00> : vector<8xf32>
    %37 = vector.multi_reduction <add>, %36, %cst_12 [1] : vector<8x512xf32> to vector<8xf32>
    %38 = vector.shape_cast %37 : vector<8xf32> to vector<8x1xf32>
    %cst_13 = arith.constant 0.00308641978 : f32
    %39 = vector.broadcast %cst_13 : f32 to vector<8x1xf32>
    %40 = arith.mulf %35, %39 : vector<8x1xf32>
    %cst_14 = arith.constant 0.00308641978 : f32
    %41 = vector.broadcast %cst_14 : f32 to vector<8x1xf32>
    %42 = arith.mulf %38, %41 : vector<8x1xf32>
    %43 = arith.mulf %40, %40 : vector<8x1xf32>
    %44 = arith.subf %42, %43 : vector<8x1xf32>
    %45 = vector.extract_strided_slice %2 {offsets = [0, 0], sizes = [8, 1], strides = [1, 1]} : vector<8x4xf32> to vector<8x1xf32>
    %cst_15 = arith.constant 9.99999974E-6 : f32
    %46 = vector.broadcast %cst_15 : f32 to vector<8x1xf32>
    %47 = arith.addf %44, %46 : vector<8x1xf32>
    %48 = math.rsqrt %47 : vector<8x1xf32>
    %49 = arith.mulf %45, %48 : vector<8x1xf32>
    %50 = vector.broadcast %40 : vector<8x1xf32> to vector<8x512xf32>
    %51 = arith.subf %14, %50 : vector<8x512xf32>
    %52 = vector.broadcast %49 : vector<8x1xf32> to vector<8x512xf32>
    %53 = arith.mulf %51, %52 : vector<8x512xf32>
    %54 = vector.extract_strided_slice %2 {offsets = [0, 1], sizes = [8, 1], strides = [1, 1]} : vector<8x4xf32> to vector<8x1xf32>
    %55 = vector.broadcast %54 : vector<8x1xf32> to vector<8x512xf32>
    %56 = arith.addf %53, %55 : vector<8x512xf32>
    %cst_16 = arith.constant 0.000000e+00 : f32
    %57 = vector.broadcast %cst_16 : f32 to vector<8x512xf32>
    %58 = arith.maximumf %56, %57 : vector<8x512xf32>
    %59 = vector.extract_strided_slice %58 {offsets = [0, 0], sizes = [8, 384], strides = [1, 1]} : vector<8x512xf32> to vector<8x384xf32>
    %60 = vector.extract_strided_slice %58 {offsets = [0, 1], sizes = [8, 384], strides = [1, 1]} : vector<8x512xf32> to vector<8x384xf32>
    %61 = vector.extract_strided_slice %58 {offsets = [0, 2], sizes = [8, 384], strides = [1, 1]} : vector<8x512xf32> to vector<8x384xf32>
    %62 = vector.extract_strided_slice %58 {offsets = [0, 20], sizes = [8, 384], strides = [1, 1]} : vector<8x512xf32> to vector<8x384xf32>
    %63 = vector.extract_strided_slice %58 {offsets = [0, 21], sizes = [8, 384], strides = [1, 1]} : vector<8x512xf32> to vector<8x384xf32>
    %64 = vector.extract_strided_slice %58 {offsets = [0, 22], sizes = [8, 384], strides = [1, 1]} : vector<8x512xf32> to vector<8x384xf32>
    %65 = vector.extract_strided_slice %58 {offsets = [0, 40], sizes = [8, 384], strides = [1, 1]} : vector<8x512xf32> to vector<8x384xf32>
    %66 = vector.extract_strided_slice %58 {offsets = [0, 41], sizes = [8, 384], strides = [1, 1]} : vector<8x512xf32> to vector<8x384xf32>
    %67 = vector.extract_strided_slice %58 {offsets = [0, 42], sizes = [8, 384], strides = [1, 1]} : vector<8x512xf32> to vector<8x384xf32>
    %68 = tpu.concatenate %59, %60, %61, %62, %63, %64, %65, %66, %67 in 0 : vector<8x384xf32>, vector<8x384xf32>, vector<8x384xf32>, vector<8x384xf32>, vector<8x384xf32>, vector<8x384xf32>, vector<8x384xf32>, vector<8x384xf32>, vector<8x384xf32> -> vector<72x384xf32>
    %c0_17 = arith.constant 0 : index
    %c0_18 = arith.constant 0 : index
    %69 = vector.load %arg3[%c0_17, %c0_18] : memref<8x72xf32, #tpu.memory_space<vmem>>, vector<8x72xf32>
    %cst_19 = arith.constant dense<0.000000e+00> : vector<8x384xf32>
    %70 = tpu.matmul %69, %68, %cst_19 {dimension_numbers = #tpu.dot_dimension_numbers<[1], [0], [0], [1], [0, 0, 1, 1], [], []>} : vector<8x72xf32>, vector<72x384xf32>, vector<8x384xf32> -> vector<8x384xf32>
    %71 = tpu.iota {dimensions = array<i32: 1>} : vector<1x384xi32>
    %72 = arith.sitofp %71 : vector<1x384xi32> to vector<1x384xf32>
    %cst_20 = arith.constant 5.000000e-01 : f32
    %73 = vector.broadcast %cst_20 : f32 to vector<1x384xf32>
    %74 = arith.addf %72, %73 : vector<1x384xf32>
    %cst_21 = arith.constant 5.000000e-02 : f32
    %75 = vector.broadcast %cst_21 : f32 to vector<1x384xf32>
    %76 = arith.mulf %74, %75 : vector<1x384xf32>
    %77 = math.floor %76 : vector<1x384xf32>
    %cst_22 = arith.constant 2.000000e+01 : f32
    %78 = vector.broadcast %cst_22 : f32 to vector<1x384xf32>
    %79 = arith.mulf %77, %78 : vector<1x384xf32>
    %80 = arith.subf %72, %79 : vector<1x384xf32>
    %cst_23 = arith.constant 3.200000e+02 : f32
    %81 = vector.broadcast %cst_23 : f32 to vector<1x384xf32>
    %82 = arith.cmpf olt, %72, %81 : vector<1x384xf32>
    %cst_24 = arith.constant 1.600000e+01 : f32
    %83 = vector.broadcast %cst_24 : f32 to vector<1x384xf32>
    %84 = arith.cmpf olt, %80, %83 : vector<1x384xf32>
    %85 = arith.andi %82, %84 : vector<1x384xi1>
    %86 = arith.extui %85 : vector<1x384xi1> to vector<1x384xi32>
    %87 = arith.sitofp %86 : vector<1x384xi32> to vector<1x384xf32>
    %88 = vector.broadcast %87 : vector<1x384xf32> to vector<8x384xf32>
    %89 = arith.mulf %70, %88 : vector<8x384xf32>
    %cst_25 = arith.constant dense<0.000000e+00> : vector<8xf32>
    %90 = vector.multi_reduction <add>, %89, %cst_25 [1] : vector<8x384xf32> to vector<8xf32>
    %91 = vector.shape_cast %90 : vector<8xf32> to vector<8x1xf32>
    %92 = arith.mulf %89, %89 : vector<8x384xf32>
    %cst_26 = arith.constant dense<0.000000e+00> : vector<8xf32>
    %93 = vector.multi_reduction <add>, %92, %cst_26 [1] : vector<8x384xf32> to vector<8xf32>
    %94 = vector.shape_cast %93 : vector<8xf32> to vector<8x1xf32>
    %cst_27 = arith.constant 3.906250e-03 : f32
    %95 = vector.broadcast %cst_27 : f32 to vector<8x1xf32>
    %96 = arith.mulf %91, %95 : vector<8x1xf32>
    %cst_28 = arith.constant 3.906250e-03 : f32
    %97 = vector.broadcast %cst_28 : f32 to vector<8x1xf32>
    %98 = arith.mulf %94, %97 : vector<8x1xf32>
    %99 = arith.mulf %96, %96 : vector<8x1xf32>
    %100 = arith.subf %98, %99 : vector<8x1xf32>
    %101 = vector.extract_strided_slice %2 {offsets = [0, 2], sizes = [8, 1], strides = [1, 1]} : vector<8x4xf32> to vector<8x1xf32>
    %cst_29 = arith.constant 9.99999974E-6 : f32
    %102 = vector.broadcast %cst_29 : f32 to vector<8x1xf32>
    %103 = arith.addf %100, %102 : vector<8x1xf32>
    %104 = math.rsqrt %103 : vector<8x1xf32>
    %105 = arith.mulf %101, %104 : vector<8x1xf32>
    %106 = vector.broadcast %96 : vector<8x1xf32> to vector<8x384xf32>
    %107 = arith.subf %70, %106 : vector<8x384xf32>
    %108 = vector.broadcast %105 : vector<8x1xf32> to vector<8x384xf32>
    %109 = arith.mulf %107, %108 : vector<8x384xf32>
    %110 = vector.extract_strided_slice %2 {offsets = [0, 3], sizes = [8, 1], strides = [1, 1]} : vector<8x4xf32> to vector<8x1xf32>
    %111 = vector.broadcast %110 : vector<8x1xf32> to vector<8x384xf32>
    %112 = arith.addf %109, %111 : vector<8x384xf32>
    %cst_30 = arith.constant 0.000000e+00 : f32
    %113 = vector.broadcast %cst_30 : f32 to vector<8x384xf32>
    %114 = arith.maximumf %112, %113 : vector<8x384xf32>
    %c0_31 = arith.constant 0 : index
    %c0_32 = arith.constant 0 : index
    %c0_33 = arith.constant 0 : index
    %115 = vector.load %arg5[%c0_31, %c0_32, %c0_33] : memref<1x8x384xf32, #tpu.memory_space<vmem>>, vector<1x8x384xf32>
    %116 = vector.shape_cast %115 : vector<1x8x384xf32> to vector<8x384xf32>
    %117 = vector.shape_cast %114 : vector<8x384xf32> to vector<1x8x384xf32>
    tpu.vector_store %arg5[%c0_31, %c0_32, %c0_33], %117 {strides = array<i32>} : memref<1x8x384xf32, #tpu.memory_space<vmem>>, vector<1x8x384xf32>,
    return
  }
  func.func @transform_0(%arg0: i32) -> (i32, i32, i32) {
    %c0_i32 = arith.constant 0 : i32
    %c0_i32_0 = arith.constant 0 : i32
    %c0_i32_1 = arith.constant 0 : i32
    return %arg0, %c0_i32, %c0_i32_0 : i32, i32, i32
  }
  func.func @transform_1(%arg0: i32) -> (i32, i32) {
    %c0_i32 = arith.constant 0 : i32
    %c0_i32_0 = arith.constant 0 : i32
    %c0_i32_1 = arith.constant 0 : i32
    return %c0_i32, %c0_i32_0 : i32, i32
  }
  func.func @transform_2(%arg0: i32) -> (i32, i32) {
    %c0_i32 = arith.constant 0 : i32
    %c0_i32_0 = arith.constant 0 : i32
    %c0_i32_1 = arith.constant 0 : i32
    return %c0_i32, %c0_i32_0 : i32, i32
  }
  func.func @transform_3(%arg0: i32) -> (i32, i32) {
    %c0_i32 = arith.constant 0 : i32
    %c0_i32_0 = arith.constant 0 : i32
    %c0_i32_1 = arith.constant 0 : i32
    return %c0_i32, %c0_i32_0 : i32, i32
  }
  func.func @transform_4(%arg0: i32) -> (i32, i32, i32) {
    %c0_i32 = arith.constant 0 : i32
    %c0_i32_0 = arith.constant 0 : i32
    %c0_i32_1 = arith.constant 0 : i32
    return %arg0, %c0_i32, %c0_i32_0 : i32, i32, i32
  }
}

</mosaic_0001>

<bundles_post_ra>
// kernel: updown_forward.1
= control target key start
LH: loop header
LB: loop body
LE: loop exit
PB: predicated region body
PF: predicated region fallthrough
CT: control target
= control target key end

     0   :  { %s1317_s15 = smov 0   ;;  %s1518_s0 = inlined_call_operand.vmem [shape: f32[2,8,560], index: 0, kind: input, shape index: {}]   ;;  %s1519_s1 = inlined_call_operand.vmem [shape: f32[8,72], index: 1, kind: input, shape index: {}]   ;;  %s1520_s2 = inlined_call_operand.vmem [shape: f32[8,72], index: 2, kind: input, shape index: {}]   ;;  %s1521_s3 = inlined_call_operand.vmem [shape: f32[8,4], index: 3, kind: input, shape index: {}]   ;;  %s1522_s4 = inlined_call_operand.vmem [shape: f32[2,8,384], index: 4, kind: output, shape index: {}]  }
   0x1 LB: > { %s984_s16 = sadd.s32 4294967295, %s1275_s15   ;;  %p988_p0 = scmp.ge.s32.totalorder %s1275_s15, 1  ;;  %s1275_s15 = sphi %s1317_s15, %s14_s15  }
   0x2   : > { %p162_p1 = scmp.lt.s32.totalorder %s1275_s15, 3 }
   0x4   : > { %p163_p2 = pnand %p988_p0, %p162_p1 }
   0x5   : > { %p188_p3 = scmp.lt.s32.totalorder (!%p163_p2), %s984_s16, 1  ;;  %s1277_s21 = smov (!%p163_p2), 127   ;;  %v1284_v7 = vmov (!%p163_p2), 0.0   ;;  %vm219_vm0 = vcmask (!%p163_p2), 1039360   ;;  %vm238_vm1 = vcmask (!%p163_p2), 1031168   ;;  %vm257_vm2 = vcmask (!%p163_p2), 883712  }
   0x6   : > { %166 = sbr.rel (%p163_p2) target bundleno = 1382 (0x566), region = 36  ;;  %s1278_s22 = smov (!%p163_p2), 126   ;;  %430 = vmatprep.mubr.f32.mxu0 (!%p163_p2), %v1284_v7  ;;  %501 = vmatprep.mubr.f32.mxu1 (!%p163_p2), %v1284_v7  ;;  %vm276_vm3 = vcmask (!%p163_p2), 875520   ;;  %vm1527_vm4 = vcmask (!%p163_p2), 867328   ;;  %vm1526_vm5 = vcmask (!%p163_p2), 719872   ;;  %vm1525_vm6 = vcmask (!%p163_p2), 711680  }
   0x7   : > { %s1279_s23 = smov (!%p163_p2), 108   ;;  %s1280_s24 = smov (!%p163_p2), 107   ;;  %vm1524_vm7 = vcmask (!%p163_p2), 703488   ;;  %vm1523_vm8 = vcmask (!%p163_p2), 588800  }
   0x8   : > { %s1281_s25 = smov (!%p163_p2), 106   ;;  %s1282_s26 = smov (!%p163_p2), 88  }
   0x9   : > { %s1283_s27 = smov (!%p163_p2), 87   ;;  %s1285_s28 = smov (!%p163_p2), 86  }
   0xd   : > { %s1543_s16 = smov (!%p188_p3, %s984_s16), 1 }
   0xe   : > { %s1095_s17 = smul.u32 40, %s1543_s16 }
   0xf   : > { %s1096_s9 = smul.u32 24, %s1543_s16 }
  0x10   : > { %s192_s20 = scalar_lea.vmem %s1518_s0, %s1095_s17 }
  0x11   : > { %v202_v0 = vld [vmem:[%s192_s20 + $0x20] sm:$0xff]  ;;  %v199_v1 = vld [vmem:[%s192_s20 + $0x8] sm:$0xff]  ;;  %v1331_v2 = vld [vmem:[%s192_s20 + $0x10] sm:$0xff]  ;;  %s197_s12 = scalar_lea.vmem %s1522_s4, %s1096_s9 }
  0x12   : > { %217 = vrot.lane.b32.xlu1 %v202_v0, %s1277_s21  ;;  %v1120_v3 = vpack.i.bf16 %v1331_v2, %v199_v1  ;;  %v1335_v4 = vld [vmem:[%s192_s20] sm:$0xff]  ;;  %v1337_v5 = vld [vmem:[%s192_s20 + $0x18] sm:$0xff] }
  0x13   : > { %v1125_v6 = vpack.i.bf16 %v1337_v5, %v1335_v4 }
  0x14   : > { %1121 = vrot.lane.b32.xlu0 %v1120_v3, %s1277_s21 }
  0x16   : > { %1131 = vrot.lane.b32.xlu1 %v1120_v3, %s1278_s22 }
  0x18   : > { %1126 = vrot.lane.b32.xlu0 %v1125_v6, %s1277_s21 }
  0x1a   : > { %1141 = vrot.lane.b32.xlu1 %v1125_v6, %s1278_s22 }
  0x1c   : > { %1136 = vrot.lane.b32.xlu0 %v1120_v3, %s1279_s23 }
  0x1e   : > { %236 = vrot.lane.b32.xlu1 %v202_v0, %s1278_s22 }
  0x20   : > { %1146 = vrot.lane.b32.xlu0 %v1125_v6, %s1279_s23 }
  0x22   : > { %1151 = vrot.lane.b32.xlu1 %v1120_v3, %s1280_s24 }
  0x24   : > { %255 = vrot.lane.b32.xlu0 %v202_v0, %s1279_s23 }
  0x26   : > { %1161 = vrot.lane.b32.xlu1 %v1125_v6, %s1280_s24 }
  0x28   : > { %1156 = vrot.lane.b32.xlu0 %v1120_v3, %s1281_s25 }
  0x2a   : > { %274 = vrot.lane.b32.xlu1 %v202_v0, %s1280_s24 }
  0x2c   : > { %1166 = vrot.lane.b32.xlu0 %v1125_v6, %s1281_s25 }
  0x2e   : > { %1171 = vrot.lane.b32.xlu1 %v1120_v3, %s1282_s26 }
  0x30   : > { %293 = vrot.lane.b32.xlu0 %v202_v0, %s1281_s25 }
  0x32   : > { %1181 = vrot.lane.b32.xlu1 %v1125_v6, %s1282_s26 }
  0x34   : > { %1176 = vrot.lane.b32.xlu0 %v1120_v3, %s1283_s27 }
  0x36   : > { %312 = vrot.lane.b32.xlu1 %v202_v0, %s1282_s26 }
  0x38   : > { %1186 = vrot.lane.b32.xlu0 %v1125_v6, %s1283_s27 }
  0x3a   : > { %344 = vrot.lane.b32.xlu1 %v199_v1, %s1285_s28 }
  0x3c   : > { %331 = vrot.lane.b32.xlu0 %v202_v0, %s1283_s27 }
  0x3e   : > { %342 = vrot.lane.b32.xlu1 %v1335_v4, %s1285_s28 }
  0x40   : > { %346 = vrot.lane.b32.xlu0 %v1331_v2, %s1285_s28 }
  0x42   : > { %350 = vrot.lane.b32.xlu1 %v202_v0, %s1285_s28 }
  0x44   : > { %348 = vrot.lane.b32.xlu0 %v1337_v5, %s1285_s28 }
  0x84   : > { %v218_v8 = vpop.permute.xlu1 %217 }
  0x86   : > { %v1122_v9 = vpop.permute.xlu0 %1121 }
  0x87   : > { %v1124_v10 = vunpack.i.h.bf16 %v1122_v9  ;;  %v1123_v11 = vunpack.i.l.bf16 %v1122_v9 }
  0x88   : > { %v1132_v12 = vpop.permute.xlu1 %1131 }
  0x89   : > { %v221_v13 = vsel %vm219_vm0, %v1123_v11, %v1124_v10  ;;  %v1134_v19 = vunpack.i.h.bf16 %v1132_v12  ;;  %v1133_v20 = vunpack.i.l.bf16 %v1132_v12 }
  0x8a   : > { %v1127_v14 = vpop.permute.xlu0 %1126  ;;  %v1035_v15 = vpack.c.bf16 %v221_v13, %v199_v1 }
  0x8b   : > { %v1129_v16 = vunpack.i.h.bf16 %v1127_v14  ;;  %v1128_v17 = vunpack.i.l.bf16 %v1127_v14  ;;  %v240_v32 = vsel %vm238_vm1, %v1133_v20, %v1134_v19 }
  0x8c   : > { %1036 = vmatprep.subr.bf16.mxu0 %v1035_v15  ;;  %v1142_v18 = vpop.permute.xlu1 %1141 }
  0x8d   : > { %v220_v21 = vsel %vm219_vm0, %v1128_v17, %v1123_v11  ;;  %v223_v22 = vsel %vm219_vm0, %v1129_v16, %v218_v8  ;;  %v222_v26 = vsel %vm219_vm0, %v1124_v10, %v1129_v16  ;;  %v1143_v31 = vunpack.i.l.bf16 %v1142_v18 }
  0x8e   : > { %v1137_v23 = vpop.permute.xlu0 %1136  ;;  %v1037_v24 = vpack.c.bf16 %v220_v21, %v1335_v4  ;;  %v1051_v25 = vpack.c.bf16 %v223_v22, %v1337_v5  ;;  %v1053_v29 = vpack.c.bf16 %v222_v26, %v1331_v2  ;;  %v1144_v38 = vunpack.i.h.bf16 %v1142_v18 }
  0x8f   : > { %v1139_v27 = vunpack.i.h.bf16 %v1137_v23  ;;  %v1138_v28 = vunpack.i.l.bf16 %v1137_v23  ;;  %v239_v40 = vsel %vm238_vm1, %v1143_v31, %v1133_v20 }
  0x90   : > { %v237_v30 = vpop.permute.xlu1 %236  ;;  %1038 = vmatpush1.bf16.msra.mxu0 %v1037_v24  ;;  %1052 = vmatprep.subr.bf16.mxu1 %v1051_v25  ;;  %v241_v49 = vsel %vm238_vm1, %v1134_v19, %v1144_v38 }
  0x91   : > { %1054 = vmatpush1.bf16.msra.mxu1 %v1053_v29  ;;  %v259_v33 = vsel %vm257_vm2, %v1138_v28, %v1139_v27  ;;  %v242_v45 = vsel %vm238_vm1, %v1144_v38, %v237_v30 }
  0x92   : > { %v1147_v34 = vpop.permute.xlu0 %1146  ;;  %v1039_v35 = vpack.c.bf16 %v259_v33, %v240_v32 }
  0x93   : > { %v1149_v36 = vunpack.i.h.bf16 %v1147_v34  ;;  %v1148_v37 = vunpack.i.l.bf16 %v1147_v34 }
  0x94   : > { %v1152_v39 = vpop.permute.xlu1 %1151  ;;  %1040 = vmatprep.subr.bf16.mxu0 %v1039_v35 }
  0x95   : > { %v258_v41 = vsel %vm257_vm2, %v1148_v37, %v1138_v28  ;;  %v260_v44 = vsel %vm257_vm2, %v1139_v27, %v1149_v36  ;;  %v1154_v50 = vunpack.i.h.bf16 %v1152_v39  ;;  %v1153_v51 = vunpack.i.l.bf16 %v1152_v39 }
  0x96   : > { %v256_v42 = vpop.permute.xlu0 %255  ;;  %v1041_v43 = vpack.c.bf16 %v258_v41, %v239_v40  ;;  %v1057_v52 = vpack.c.bf16 %v260_v44, %v241_v49 }
  0x97   : > { %v261_v46 = vsel %vm257_vm2, %v1149_v36, %v256_v42  ;;  %v278_v58 = vsel %vm276_vm3, %v1153_v51, %v1154_v50  ;;  %v361_v42 = vld [vmem:[%s1519_s1] sm:$0xff] }
  0x98   : > { %v1055_v47 = vpack.c.bf16 %v261_v46, %v242_v45  ;;  %v1162_v48 = vpop.permute.xlu1 %1161  ;;  %1042 = vmatpush1.bf16.msra.mxu0 %v1041_v43 }
  0x99   : > { %v1163_v57 = vunpack.i.l.bf16 %v1162_v48  ;;  %v1164_v0 = vunpack.i.h.bf16 %v1162_v48  ;;  %v508_v48 = vlaneseq }
  0x9a   : > { %v1157_v53 = vpop.permute.xlu0 %1156  ;;  %1056 = vmatprep.subr.bf16.mxu1 %v1055_v47 }
  0x9b   : > { %v1159_v54 = vunpack.i.h.bf16 %v1157_v53  ;;  %v1158_v55 = vunpack.i.l.bf16 %v1157_v53  ;;  %1058 = vmatpush1.bf16.msra.mxu1 %v1057_v52  ;;  %v277_v2 = vsel %vm276_vm3, %v1163_v57, %v1153_v51  ;;  %v279_v12 = vsel %vm276_vm3, %v1154_v50, %v1164_v0 }
  0x9c   : > { %v275_v56 = vpop.permute.xlu1 %274  ;;  %v509_v49 = vand.u32 127, %v508_v48 }
  0x9d   : > { %v297_v59 = vsel %vm1527_vm4, %v1158_v55, %v1159_v54  ;;  %v280_v8 = vsel %vm276_vm3, %v1164_v0, %v275_v56 }
  0x9e   : > { %v1167_v60 = vpop.permute.xlu0 %1166  ;;  %v1043_v61 = vpack.c.bf16 %v297_v59, %v278_v58  ;;  %v510_v50 = vadd.s32 128, %v509_v49  ;;  %v1412_v51 = vcvt.s32.f32 %v509_v49  ;;  %v511_v52 = vadd.s32 256, %v509_v49 }
  0x9f   : > { %v1169_v62 = vunpack.i.h.bf16 %v1167_v60  ;;  %v1168_v63 = vunpack.i.l.bf16 %v1167_v60 }
  0xa0   : > { %v1172_v1 = vpop.permute.xlu1 %1171  ;;  %1044 = vmatprep.subr.bf16.mxu0 %v1043_v61  ;;  %v1414_v53 = vcvt.s32.f32 %v510_v50  ;;  %v1417_v56 = vcvt.s32.f32 %v511_v52  ;;  %vm537_vm9 = vcmp.lt.f32.partialorder %v1412_v51, 360.0 }
  0xa1   : > { %v296_v3 = vsel %vm1527_vm4, %v1168_v63, %v1158_v55  ;;  %v298_v6 = vsel %vm1527_vm4, %v1159_v54, %v1169_v62  ;;  %v1174_v13 = vunpack.i.h.bf16 %v1172_v1  ;;  %v1173_v14 = vunpack.i.l.bf16 %v1172_v1 }
  0xa2   : > { %v294_v4 = vpop.permute.xlu0 %293  ;;  %v1045_v5 = vpack.c.bf16 %v296_v3, %v277_v2  ;;  %v1061_v15 = vpack.c.bf16 %v298_v6, %v279_v12  ;;  %v512_v54 = vadd.s32 384, %v509_v49  ;;  %v517_v55 = vadd.f32 0.5, %v1412_v51 }
  0xa3   : > { %v299_v9 = vsel %vm1527_vm4, %v1169_v62, %v294_v4  ;;  %v316_v21 = vsel %vm1526_vm5, %v1173_v14, %v1174_v13  ;;  %v518_v57 = vadd.f32 0.5, %v1414_v53  ;;  %v519_v60 = vadd.f32 0.5, %v1417_v56 }
  0xa4   : > { %v1059_v10 = vpack.c.bf16 %v299_v9, %v280_v8  ;;  %v1182_v11 = vpop.permute.xlu1 %1181  ;;  %1046 = vmatpush1.bf16.msra.mxu0 %v1045_v5  ;;  %v516_v58 = vcvt.s32.f32 %v512_v54  ;;  %v521_v59 = vmul.f32 0.05, %v517_v55  ;;  %vm538_vm11 = vcmp.lt.f32.partialorder %v1414_v53, 360.0 }
  0xa5   : > { %v1183_v20 = vunpack.i.l.bf16 %v1182_v11  ;;  %v1184_v27 = vunpack.i.h.bf16 %v1182_v11  ;;  %v522_v61 = vmul.f32 0.05, %v518_v57  ;;  %v523_v0 = vmul.f32 0.05, %v519_v60 }
  0xa6   : > { %v1177_v16 = vpop.permute.xlu0 %1176  ;;  %1060 = vmatprep.subr.bf16.mxu1 %v1059_v10  ;;  %v520_v62 = vadd.f32 0.5, %v516_v58  ;;  %v525_v63 = vfloor.f32 %v521_v59  ;;  %vm539_vm15 = vcmp.lt.f32.partialorder %v1417_v56, 360.0 }
  0xa7   : > { %v1179_v17 = vunpack.i.h.bf16 %v1177_v16  ;;  %v1178_v18 = vunpack.i.l.bf16 %v1177_v16  ;;  %1062 = vmatpush1.bf16.msra.mxu1 %v1061_v15  ;;  %v315_v29 = vsel %vm1526_vm5, %v1183_v20, %v1173_v14  ;;  %v317_v38 = vsel %vm1526_vm5, %v1174_v13, %v1184_v27 }
  0xa8   : > { %v313_v19 = vpop.permute.xlu1 %312  ;;  %v526_v1 = vfloor.f32 %v522_v61  ;;  %v524_v2 = vmul.f32 0.05, %v520_v62  ;;  %v529_v3 = vmul.f32 20.0, %v525_v63  ;;  %v527_v4 = vfloor.f32 %v523_v0 }
  0xa9   : > { %v335_v22 = vsel %vm1525_vm6, %v1178_v18, %v1179_v17  ;;  %v318_v34 = vsel %vm1526_vm5, %v1184_v27, %v313_v19 }
  0xaa   : > { %v1187_v23 = vpop.permute.xlu0 %1186  ;;  %v1047_v24 = vpack.c.bf16 %v335_v22, %v316_v21  ;;  %v530_v5 = vmul.f32 20.0, %v526_v1  ;;  %v528_v6 = vfloor.f32 %v524_v2  ;;  %v1422_v8 = vsub.f32 %v1412_v51, %v529_v3 }
  0xab   : > { %v1189_v25 = vunpack.i.h.bf16 %v1187_v23  ;;  %v1188_v26 = vunpack.i.l.bf16 %v1187_v23  ;;  %v531_v9 = vmul.f32 20.0, %v527_v4  ;;  %v1288_v3 = vmov 0.0|0.0  }
  0xac   : > { %v345_v28 = vpop.permute.xlu1 %344  ;;  %1048 = vmatprep.subr.bf16.mxu0 %v1047_v24  ;;  %v1425_v10 = vsub.f32 %v1414_v53, %v530_v5  ;;  %v532_v11 = vmul.f32 20.0, %v528_v6  ;;  %vm541_vm10 = vcmp.lt.f32.partialorder %v1422_v8, 18.0 }
  0xad   : > { %v334_v30 = vsel %vm1525_vm6, %v1188_v26, %v1178_v18  ;;  %v336_v33 = vsel %vm1525_vm6, %v1179_v17, %v1189_v25  ;;  %v1430_v12 = vsub.f32 %v1417_v56, %v531_v9  ;;  %vm545_vm13 = vmand %vm537_vm9, %vm541_vm10  ;;  %vm1537_vm10 = vcmask 703488  }
  0xae   : > { %v332_v31 = vpop.permute.xlu0 %331  ;;  %v1049_v32 = vpack.c.bf16 %v334_v30, %v315_v29  ;;  %v1065_v39 = vpack.c.bf16 %v336_v33, %v317_v38  ;;  %vm542_vm12 = vcmp.lt.f32.partialorder %v1425_v10, 18.0  ;;  %v536_v13 = vsub.f32 %v516_v58, %v532_v11 }
  0xaf   : > { %v337_v35 = vsel %vm1525_vm6, %v1189_v25, %v332_v31  ;;  %vm546_vm14 = vmand %vm538_vm11, %vm542_vm12  ;;  %v993_v14 = vsel %vm545_vm13, 1.0, %v1284_v7  ;;  %v1287_v38 = vmov 1   ;;  %vm1540_vm13 = vcmask 588800  }
  0xb0   : > { %v1063_v36 = vpack.c.bf16 %v337_v35, %v318_v34  ;;  %v343_v37 = vpop.permute.xlu1 %342  ;;  %1050 = vmatpush1.bf16.msra.mxu0 %v1049_v32  ;;  %vm544_vm6 = vcmp.lt.f32.partialorder %v536_v13, 18.0  ;;  %v994_v15 = vsel %vm546_vm14, 1.0, %v1284_v7  ;;  %1191 = vset.pattern.permute.xlu1 %v1287_v38  ;;  %vm1538_vm11 = vmmov %vm1537_vm10 }
  0xb1   : > { %v353_v43 = vsel %vm1524_vm7, %v343_v37, %v345_v28  ;;  %v1443_v37 = vld [vmem:[%s1521_s3] sm:$0xff]  ;;  %vm1539_vm12 = vmmov %vm1537_vm10 }
  0xb2   : > { %v347_v40 = vpop.permute.xlu0 %346  ;;  %1064 = vmatprep.subr.bf16.mxu1 %v1063_v36  ;;  %v1286_v36 = vmov 0   ;;  %vm1541_vm14 = vmmov %vm1540_vm13 }
  0xb3   : > { %1066 = vmatpush1.bf16.msra.mxu1 %v1065_v39  ;;  %v354_v41 = vsel %vm1524_vm7, %v345_v28, %v347_v40  ;;  %1190 = vset.pattern.permute.xlu0 %v1286_v36 }
  0xb4   : > { %382 = vmatprep.subr.mxu0 %v354_v41  ;;  %v351_v44 = vpop.permute.xlu1 %350 }
  0xb5   : > { %383 = vmatpush1.msra.mxu0 %v353_v43 }
  0xb6   : > { %v349_v45 = vpop.permute.xlu0 %348  ;;  %991 = vmatmul.mubr.msk.f32.vlgmr.msra.gmra.mrb[0].mxu0 %vm1523_vm8, %v361_v42 }
  0xb7   : > { %v356_v46 = vsel %vm1524_vm7, %v349_v45, %v351_v44  ;;  %v355_v47 = vsel %vm1524_vm7, %v347_v40, %v349_v45  ;;  %792 = vmatprep.mubr.f32.mxu0 %v1284_v7  ;;  %vm540_vm7 = vcmp.lt.f32.partialorder %v516_v58, 360.0 }
  0xb8   : > { %453 = vmatprep.subr.mxu1 %v356_v46  ;;  %vm548_vm4 = vmand %vm540_vm7, %vm544_vm6 }
  0xb9   : > { %454 = vmatpush1.msra.mxu1 %v355_v47  ;;  %v996_v22 = vsel %vm548_vm4, 1.0, %v1284_v7  ;;  %vm1289_vm4 = vmmov 0  }
  0xba   : > { %992 = vmatmul.mubr.msk.f32.vlgmr.msra.gmra.mrb[0].mxu1 %vm1523_vm8, %v361_v42  ;;  %vm543_vm8 = vcmp.lt.f32.partialorder %v1430_v12, 18.0  ;;  %1083 = vmatprep.subr.bf16.mxu1 %v1288_v3 }
  0xbb   : > { %vm547_vm5 = vmand %vm539_vm15, %vm543_vm8  ;;  %1032 = vmatprep.mubr.msk.f32.mxu1 %vm1289_vm4, %v1284_v7  ;;  %vm869_vm15 = vcmp.lt.f32.partialorder %v1412_v51, 320.0  ;;  %vm872_vm4 = vcmp.lt.f32.partialorder %v1422_v8, 16.0 }
  0xbc   : > { %v995_v20 = vsel %vm547_vm5, 1.0, %v1284_v7  ;;  %vm1531_vm5 = vcmask 719872  }
  0xbd   : > { %vm1533_vm6 = vmmov %vm1531_vm5 }
  0xbe   : > { %vm1534_vm7 = vmmov %vm1531_vm5 }
 0x189   : > { %v432_v16 = vpop.f32.mrb[0].mxu0 }
 0x18a   : > { %v557_v17 = vmul.f32 %v993_v14, %v432_v16  ;;  %v434_v18 = vpop.f32.mrb[1].mxu0 }
 0x18b   : > { %v558_v19 = vmul.f32 %v994_v15, %v434_v18 }
 0x18c   : > { %v566_v21 = vmul.f32 %v557_v17, %v557_v17 }
 0x18d   : > { %v561_v23 = vadd.f32 %v558_v19, %v557_v17  ;;  %v567_v24 = vmul.f32 %v558_v19, %v558_v19  ;;  %v503_v25 = vpop.f32.mrb[0].mxu1 }
 0x18e   : > { %v559_v26 = vmul.f32 %v995_v20, %v503_v25  ;;  %v505_v27 = vpop.f32.mrb[1].mxu1 }
 0x18f   : > { %v560_v28 = vmul.f32 %v996_v22, %v505_v27  ;;  %v570_v29 = vadd.f32 %v567_v24, %v566_v21 }
 0x190   : > { %v568_v30 = vmul.f32 %v559_v26, %v559_v26  ;;  %v562_v31 = vadd.f32 %v561_v23, %v559_v26 }
 0x191   : > { %v569_v32 = vmul.f32 %v560_v28, %v560_v28 }
 0x192   : > { %v563_v33 = vadd.f32 %v562_v31, %v560_v28  ;;  %v571_v34 = vadd.f32 %v570_v29, %v568_v30 }
 0x194   : > { %564 = vadd.xlane.f32.xlu0 %v563_v33  ;;  %v572_v35 = vadd.f32 %v571_v34, %v569_v32 }
 0x196   : > { %573 = vadd.xlane.f32.xlu1 %v572_v35 }
 0x1a7   : > { %597 = vperm.xlu1 %1191, %v1443_v37  }
 0x221   : > { %v565_v39 = vpop.xlane.xlu0 %564 }
 0x222   : > { %v575_v40 = vmul.f32 0.0030864198, %v565_v39 }
 0x223   : > { %v574_v41 = vpop.xlane.xlu1 %573 }
 0x224   : > { %v576_v42 = vmul.f32 0.0030864198, %v574_v41  ;;  %v577_v43 = vmul.f32 %v575_v40, %v575_v40  ;;  %v582_v44 = vsub.f32 %v432_v16, %v575_v40  ;;  %v583_v45 = vsub.f32 %v434_v18, %v575_v40 }
 0x225   : > { %v584_v46 = vsub.f32 %v503_v25, %v575_v40  ;;  %v585_v47 = vsub.f32 %v505_v27, %v575_v40 }
 0x226   : > { %v578_v48 = vsub.f32 %v576_v42, %v577_v43 }
 0x227   : > { %v598_v55 = vpop.permute.xlu1 %597 }
 0x228   : > { %v579_v49 = vadd.f32 1e-05, %v578_v48 }
 0x22a   : > { %1265 = vrsqrt.f32 %v579_v49 }
 0x234   : > { %v1266_v50 = vpop.eup %1265 }
 0x235   : > { %v581_v52 = vmul.f32 %v1266_v50, %v1443_v37 }
 0x237   : > { %588 = vperm.xlu0 %1190, %v581_v52  }
 0x2b6   : > { %v589_v54 = vpop.permute.xlu0 %588 }
 0x2b7   : > { %v591_v57 = vmul.f32 %v589_v54, %v582_v44  ;;  %v592_v58 = vmul.f32 %v589_v54, %v583_v45  ;;  %v593_v59 = vmul.f32 %v589_v54, %v584_v46  ;;  %v594_v60 = vmul.f32 %v589_v54, %v585_v47 }
 0x2b9   : > { %v600_v61 = vadd.f32 %v598_v55, %v591_v57  ;;  %v601_v62 = vadd.f32 %v598_v55, %v592_v58  ;;  %v602_v63 = vadd.f32 %v598_v55, %v593_v59  ;;  %v603_v0 = vadd.f32 %v598_v55, %v594_v60 }
 0x2bb   : > { %v605_v1 = vmax.f32 %v601_v62, 0.0  ;;  %v606_v2 = vmax.f32 %v602_v63, 0.0  ;;  %v604_v4 = vmax.f32 %v600_v61, 0.0  ;;  %v607_v5 = vmax.f32 %v603_v0, 0.0 }
 0x2bd   : > { %v1222_v6 = vpack.i.bf16 %v606_v2, %v605_v1  ;;  %v1232_v9 = vpack.i.bf16 %v607_v5, %v604_v4 }
 0x2bf   : > { %1223 = vrot.lane.b32.xlu0 %v1222_v6, %s1280_s24  ;;  %1193 = vrot.lane.b32.xlu1 %v1222_v6, %s1277_s21 }
 0x2c3   : > { %1233 = vrot.lane.b32.xlu0 %v1232_v9, %s1280_s24  ;;  %1198 = vrot.lane.b32.xlu1 %v1232_v9, %s1277_s21 }
 0x2c7   : > { %1243 = vrot.lane.b32.xlu0 %v1222_v6, %s1282_s26  ;;  %1203 = vrot.lane.b32.xlu1 %v1222_v6, %s1278_s22 }
 0x2cb   : > { %1253 = vrot.lane.b32.xlu0 %v1232_v9, %s1282_s26  ;;  %1208 = vrot.lane.b32.xlu1 %v1222_v6, %s1279_s23 }
 0x2cf   : > { %712 = vrot.lane.b32.xlu0 %v605_v1, %s1285_s28  ;;  %1213 = vrot.lane.b32.xlu1 %v1232_v9, %s1278_s22 }
 0x2d3   : > { %710 = vrot.lane.b32.xlu0 %v604_v4, %s1285_s28  ;;  %1218 = vrot.lane.b32.xlu1 %v1232_v9, %s1279_s23 }
 0x2d7   : > { %1228 = vrot.lane.b32.xlu1 %v1222_v6, %s1281_s25 }
 0x2db   : > { %1238 = vrot.lane.b32.xlu1 %v1232_v9, %s1281_s25 }
 0x2df   : > { %1248 = vrot.lane.b32.xlu1 %v1222_v6, %s1283_s27 }
 0x2e3   : > { %1258 = vrot.lane.b32.xlu1 %v1232_v9, %s1283_s27 }
 0x2e7   : > { %714 = vrot.lane.b32.xlu1 %v606_v2, %s1285_s28 }
 0x2eb   : > { %716 = vrot.lane.b32.xlu1 %v607_v5, %s1285_s28 }
 0x331   : > { %v1194_v11 = vpop.permute.xlu1 %1193  ;;  %v1224_v27 = vpop.permute.xlu0 %1223 }
 0x332   : > { %v1196_v13 = vunpack.i.h.bf16 %v1194_v11  ;;  %v1195_v14 = vunpack.i.l.bf16 %v1194_v11  ;;  %v1226_v42 = vunpack.i.h.bf16 %v1224_v27  ;;  %v1225_v43 = vunpack.i.l.bf16 %v1224_v27 }
 0x334   : > { %v621_v15 = vsel %vm219_vm0, %v1195_v14, %v1196_v13  ;;  %v663_v59 = vsel %vm276_vm3, %v1225_v43, %v1226_v42 }
 0x335   : > { %v1199_v16 = vpop.permute.xlu1 %1198  ;;  %v1067_v17 = vpack.c.bf16 %v621_v15, %v605_v1  ;;  %v1234_v35 = vpop.permute.xlu0 %1233 }
 0x336   : > { %v1201_v18 = vunpack.i.h.bf16 %v1199_v16  ;;  %v1200_v19 = vunpack.i.l.bf16 %v1199_v16  ;;  %v1236_v57 = vunpack.i.h.bf16 %v1234_v35  ;;  %v1235_v58 = vunpack.i.l.bf16 %v1234_v35 }
 0x337   : > { %1068 = vmatprep.subr.bf16.mxu0 %v1067_v17 }
 0x338   : > { %v622_v20 = vsel %vm219_vm0, %v1196_v13, %v1201_v18  ;;  %v620_v21 = vsel %vm219_vm0, %v1200_v19, %v1195_v14  ;;  %vm1528_vm0 = vcmask 867328   ;;  %v664_v1 = vsel %vm276_vm3, %v1226_v42, %v1236_v57 }
 0x339   : > { %v1084_v22 = vpack.c.bf16 %v622_v20, %v606_v2  ;;  %v1069_v23 = vpack.c.bf16 %v620_v21, %v604_v4  ;;  %v1204_v24 = vpop.permute.xlu1 %1203  ;;  %v1244_v48 = vpop.permute.xlu0 %1243  ;;  %v662_v2 = vsel %vm276_vm3, %v1235_v58, %v1225_v43  ;;  %vm1532_vm3 = vcmask 711680  }
 0x33a   : > { %v1206_v25 = vunpack.i.h.bf16 %v1204_v24  ;;  %v1205_v26 = vunpack.i.l.bf16 %v1204_v24  ;;  %v1246_v5 = vunpack.i.h.bf16 %v1244_v48  ;;  %v1245_v6 = vunpack.i.l.bf16 %v1244_v48  ;;  %vm1535_vm8 = vmmov %vm1532_vm3 }
 0x33b   : > { %1070 = vmatpush1.bf16.msra.mxu0 %v1069_v23  ;;  %1085 = vmatpush3.bf16.msra.mxu1 %v1084_v22  ;;  %vm1536_vm9 = vmmov %vm1532_vm3 }
 0x33c   : > { %1086 = vmatprep.subr.bf16.mxu1 %v1288_v3  ;;  %v635_v31 = vsel %vm238_vm1, %v1205_v26, %v1206_v25  ;;  %v691_v20 = vsel %vm1531_vm5, %v1245_v6, %v1246_v5  ;;  %vm873_vm5 = vcmp.lt.f32.partialorder %v1425_v10, 16.0 }
 0x33d   : > { %v1209_v28 = vpop.permute.xlu1 %1208  ;;  %v1254_v4 = vpop.permute.xlu0 %1253 }
 0x33e   : > { %v1211_v29 = vunpack.i.h.bf16 %v1209_v28  ;;  %v1210_v30 = vunpack.i.l.bf16 %v1209_v28  ;;  %v1256_v18 = vunpack.i.h.bf16 %v1254_v4  ;;  %v1255_v19 = vunpack.i.l.bf16 %v1254_v4 }
 0x340   : > { %v649_v32 = vsel %vm257_vm2, %v1210_v30, %v1211_v29  ;;  %v690_v27 = vsel %vm1533_vm6, %v1255_v19, %v1245_v6  ;;  %v692_v28 = vsel %vm1534_vm7, %v1246_v5, %v1256_v18 }
 0x341   : > { %v1214_v33 = vpop.permute.xlu1 %1213  ;;  %v1071_v34 = vpack.c.bf16 %v649_v32, %v635_v31  ;;  %v713_v22 = vpop.permute.xlu0 %712 }
 0x342   : > { %v1216_v36 = vunpack.i.h.bf16 %v1214_v33  ;;  %v1215_v38 = vunpack.i.l.bf16 %v1214_v33 }
 0x343   : > { %1072 = vmatprep.subr.bf16.mxu0 %v1071_v34 }
 0x344   : > { %v634_v44 = vsel %vm238_vm1, %v1215_v38, %v1205_v26  ;;  %v636_v45 = vsel %vm238_vm1, %v1206_v25, %v1216_v36  ;;  %vm1529_vm1 = vmmov %vm1528_vm0  ;;  %v724_v36 = vld [vmem:[%s1520_s2] sm:$0xff] }
 0x345   : > { %v1219_v39 = vpop.permute.xlu1 %1218 }
 0x346   : > { %v1221_v40 = vunpack.i.h.bf16 %v1219_v39  ;;  %v1220_v41 = vunpack.i.l.bf16 %v1219_v39 }
 0x348   : > { %v648_v46 = vsel %vm257_vm2, %v1220_v41, %v1210_v30  ;;  %v650_v47 = vsel %vm257_vm2, %v1211_v29, %v1221_v40  ;;  %vm1530_vm2 = vmmov %vm1528_vm0 }
 0x349   : > { %v1073_v49 = vpack.c.bf16 %v648_v46, %v634_v44  ;;  %v1087_v50 = vpack.c.bf16 %v650_v47, %v636_v45  ;;  %v1229_v52 = vpop.permute.xlu1 %1228 }
 0x34a   : > { %v1231_v54 = vunpack.i.h.bf16 %v1229_v52  ;;  %v1230_v55 = vunpack.i.l.bf16 %v1229_v52  ;;  %v1290_v52 = vmov 2  }
 0x34b   : > { %1074 = vmatpush1.bf16.msra.mxu0 %v1073_v49  ;;  %1088 = vmatpush3.bf16.msra.mxu1 %v1087_v50 }
 0x34c   : > { %v677_v60 = vsel %vm1528_vm0, %v1230_v55, %v1231_v54  ;;  %1089 = vmatprep.subr.bf16.mxu1 %v1288_v3  ;;  %vm871_vm0 = vcmp.lt.f32.partialorder %v1417_v56, 320.0  ;;  %1262 = vset.pattern.permute.xlu0 %v1290_v52 }
 0x34d   : > { %v1239_v61 = vpop.permute.xlu1 %1238  ;;  %v1075_v62 = vpack.c.bf16 %v677_v60, %v663_v59 }
 0x34e   : > { %v1241_v63 = vunpack.i.h.bf16 %v1239_v61  ;;  %v1240_v0 = vunpack.i.l.bf16 %v1239_v61 }
 0x34f   : > { %1076 = vmatprep.subr.bf16.mxu0 %v1075_v62 }
 0x350   : > { %v676_v9 = vsel %vm1529_vm1, %v1240_v0, %v1230_v55  ;;  %v678_v11 = vsel %vm1530_vm2, %v1231_v54, %v1241_v63  ;;  %vm874_vm1 = vcmp.lt.f32.partialorder %v1430_v12, 16.0  ;;  %vm870_vm2 = vcmp.lt.f32.partialorder %v1414_v53, 320.0 }
 0x351   : > { %v1077_v13 = vpack.c.bf16 %v676_v9, %v662_v2  ;;  %v1090_v14 = vpack.c.bf16 %v678_v11, %v664_v1  ;;  %v1249_v15 = vpop.permute.xlu1 %1248  ;;  %vm877_vm6 = vmand %vm871_vm0, %vm874_vm1  ;;  %v1291_v54 = vmov 3  }
 0x352   : > { %v1251_v16 = vunpack.i.h.bf16 %v1249_v15  ;;  %v1250_v17 = vunpack.i.l.bf16 %v1249_v15  ;;  %vm876_vm7 = vmand %vm870_vm2, %vm873_vm5  ;;  %v1001_v41 = vsel %vm877_vm6, 1.0, %v1284_v7  ;;  %1263 = vset.pattern.permute.xlu1 %v1291_v54 }
 0x353   : > { %1078 = vmatpush1.bf16.msra.mxu0 %v1077_v13  ;;  %1091 = vmatpush3.bf16.msra.mxu1 %v1090_v14  ;;  %v1000_v42 = vsel %vm876_vm7, 1.0, %v1284_v7 }
 0x354   : > { %v705_v21 = vsel %vm1532_vm3, %v1250_v17, %v1251_v16  ;;  %1092 = vmatprep.subr.bf16.mxu1 %v1288_v3  ;;  %v711_v3 = vpop.permute.xlu0 %710  ;;  %vm875_vm3 = vmand %vm869_vm15, %vm872_vm4 }
 0x355   : > { %v1259_v23 = vpop.permute.xlu1 %1258  ;;  %v1079_v24 = vpack.c.bf16 %v705_v21, %v691_v20  ;;  %v718_v38 = vsel %vm1538_vm11, %v711_v3, %v713_v22  ;;  %v999_v40 = vsel %vm875_vm3, 1.0, %v1284_v7 }
 0x356   : > { %v1261_v25 = vunpack.i.h.bf16 %v1259_v23  ;;  %v1260_v26 = vunpack.i.l.bf16 %v1259_v23 }
 0x357   : > { %1080 = vmatprep.subr.bf16.mxu0 %v1079_v24 }
 0x358   : > { %v704_v29 = vsel %vm1535_vm8, %v1260_v26, %v1250_v17  ;;  %v706_v30 = vsel %vm1536_vm9, %v1251_v16, %v1261_v25 }
 0x359   : > { %v1081_v31 = vpack.c.bf16 %v704_v29, %v690_v27  ;;  %v1093_v32 = vpack.c.bf16 %v706_v30, %v692_v28  ;;  %v715_v33 = vpop.permute.xlu1 %714 }
 0x35a   : > { %v719_v34 = vsel %vm1537_vm10, %v713_v22, %v715_v33 }
 0x35b   : > { %1082 = vmatpush1.bf16.msra.mxu0 %v1081_v31  ;;  %1094 = vmatpush3.bf16.msra.mxu1 %v1093_v32 }
 0x35c   : > { %744 = vmatprep.subr.mxu0 %v719_v34  ;;  %1030 = vmatprep.subr.mxu1 %v1284_v7 }
 0x35d   : > { %v717_v35 = vpop.permute.xlu1 %716 }
 0x35e   : > { %v720_v39 = vsel %vm1539_vm12, %v715_v33, %v717_v35 }
 0x35f   : > { %745 = vmatpush1.msra.mxu0 %v718_v38  ;;  %1031 = vmatpush3.msra.mxu1 %v720_v39 }
 0x360   : > { %997 = vmatmul.mubr.msk.f32.vlgmr.msra.gmra.mrb[2].mxu0 %vm1540_vm13, %v724_v36  ;;  %1033 = vmatmul.mubr.msk.f32.vlgmr.msra.gmra.mrb[2].mxu1 %vm1541_vm14, %v724_v36 }
 0x433   : > { %v794_v51 = vpop.f32.mrb[2].mxu0  ;;  %v865_v43 = vpop.f32.mrb[2].mxu1 }
 0x434   : > { %v884_v8 = vmul.f32 %v999_v40, %v794_v51  ;;  %v796_v44 = vpop.f32.mrb[3].mxu0  ;;  %v886_v56 = vmul.f32 %v1001_v41, %v865_v43  ;;  %v1034_v45 = vpop.f32.mrb[3].mxu1 }
 0x435   : > { %v885_v12 = vmul.f32 %v1000_v42, %v796_v44 }
 0x436   : > { %v891_v46 = vmul.f32 %v884_v8, %v884_v8  ;;  %v893_v10 = vmul.f32 %v886_v56, %v886_v56 }
 0x437   : > { %v887_v53 = vadd.f32 %v885_v12, %v884_v8  ;;  %v892_v47 = vmul.f32 %v885_v12, %v885_v12 }
 0x439   : > { %v888_v48 = vadd.f32 %v887_v53, %v886_v56  ;;  %v894_v49 = vadd.f32 %v892_v47, %v891_v46 }
 0x43b   : > { %889 = vadd.xlane.f32.xlu0 %v888_v48  ;;  %v895_v50 = vadd.f32 %v894_v49, %v893_v10 }
 0x43d   : > { %896 = vadd.xlane.f32.xlu1 %v895_v50 }
 0x44e   : > { %917 = vperm.xlu1 %1263, %v1443_v37  }
 0x4c8   : > { %v890_v7 = vpop.xlane.xlu0 %889 }
 0x4c9   : > { %v898_v55 = vmul.f32 0.00390625, %v890_v7 }
 0x4ca   : > { %v897_v57 = vpop.xlane.xlu1 %896 }
 0x4cb   : > { %v899_v58 = vmul.f32 0.00390625, %v897_v57  ;;  %v900_v59 = vmul.f32 %v898_v55, %v898_v55  ;;  %v905_v60 = vsub.f32 %v794_v51, %v898_v55  ;;  %v906_v61 = vsub.f32 %v796_v44, %v898_v55 }
 0x4cc   : > { %v907_v62 = vsub.f32 %v865_v43, %v898_v55 }
 0x4cd   : > { %v901_v63 = vsub.f32 %v899_v58, %v900_v59 }
 0x4ce   : > { %v918_v5 = vpop.permute.xlu1 %917 }
 0x4cf   : > { %v902_v0 = vadd.f32 1e-05, %v901_v63 }
 0x4d1   : > { %1267 = vrsqrt.f32 %v902_v0 }
 0x4db   : > { %v1268_v1 = vpop.eup %1267 }
 0x4dc   : > { %v904_v2 = vmul.f32 %v1268_v1, %v1443_v37 }
 0x4de   : > { %910 = vperm.xlu0 %1262, %v904_v2  }
 0x4e2   : > { %1264 = vset.pattern.permute.xlu0 %v1291_v54 }
 0x55d   : > { %v911_v4 = vpop.permute.xlu0 %910 }
 0x55e   : > { %v913_v6 = vmul.f32 %v911_v4, %v905_v60  ;;  %v914_v9 = vmul.f32 %v911_v4, %v906_v61  ;;  %v915_v11 = vmul.f32 %v911_v4, %v907_v62 }
 0x560   : > { %v920_v13 = vadd.f32 %v918_v5, %v913_v6  ;;  %v921_v14 = vadd.f32 %v918_v5, %v914_v9  ;;  %v922_v15 = vadd.f32 %v918_v5, %v915_v11 }
 0x562   : > { %v923_v16 = vmax.f32 %v920_v13, 0.0  ;;  %v924_v17 = vmax.f32 %v921_v14, 0.0  ;;  %v925_v18 = vmax.f32 %v922_v15, 0.0 }
 0x564   : > { %926 = vst [vmem:[%s197_s12] sm:$0xff] %v923_v16  ;;  %927 = vst [vmem:[%s197_s12 + $0x8] sm:$0xff] %v924_v17 }
 0x565   : > { %928 = vst [vmem:[%s197_s12 + $0x10] sm:$0xff] %v925_v18 }
 0x566 PF: > { %s14_s15 = sadd.s32 1, %s1275_s15  }
 0x567   : > { %p11_p4 = scmp.ge.s32.totalorder %s14_s15, 4  }
 0x569   :  { %13 = sbr.rel (!%p11_p4) target bundleno = 1 (0x1), region = 66 }

</bundles_post_ra>
